<compile_context>
chip_gen: v7x
topology: tpu7x:2x2x1
jax: 0.10.0
libtpu: 0.0.40
codegen_flags: <defaults>
</compile_context>

<pallas_src>
import jax
import jax.numpy as jnp
from jax.experimental import pallas as pl
from jax.experimental.pallas import tpu as pltpu


def _ugrnn_chunk_kernel(x_ref, h0_ref, wx_ref, wh_ref, b_ref, out_ref, h_scr):
    """One grid step == one chunk of Tc time steps.

    x_ref  : (Tc*B, I)  compute dtype (bf16 default) - this chunk's inputs
    h0_ref : (B, H)     f32, consumed only at chunk 0
    wx_ref : (I, 2H)    compute dtype, [W1|W2], VMEM-resident across chunks
    wh_ref : (H, 2H)    compute dtype, [U1|U2], VMEM-resident across chunks
    b_ref  : (1, 2H)    f32, [bias_gate|bias_update]
    out_ref: (B, Tc*H)  f32 lane-dense slab; columns t*H:(t+1)*H hold h_{c*Tc+t}
    h_scr  : (B, H)     f32 hidden-state carry across chunks
    """
    B, H = h0_ref.shape
    Tc = x_ref.shape[0] // B
    cdt = wx_ref.dtype

    @pl.when(pl.program_id(0) == 0)
    def _():
        h_scr[...] = h0_ref[...]

    # Phase 0 (hoisted): chunk-wide input projection + bias in ONE MXU matmul
    # with M = Tc*B, removed from the serial per-step critical path.
    xp = jnp.dot(x_ref[...], wx_ref[...],
                 preferred_element_type=jnp.float32) + b_ref[...]      # (Tc*B, 2H) f32

    # Phase 1: serial recurrence; only h @ Wh remains per step.
    # Static unroll over the small fixed chunk length.
    h = h_scr[...]                                                     # (B, H) f32 carry
    wh = wh_ref[...]
    for t in range(Tc):
        pre = xp[t * B:(t + 1) * B, :] + jnp.dot(
            h.astype(cdt), wh, preferred_element_type=jnp.float32)     # (B, 2H) f32
        z = jax.nn.sigmoid(pre[:, :H])                                 # gate
        c = jnp.tanh(pre[:, H:])                                       # update candidate
        h = z * h + (1.0 - z) * c                                      # f32 carry
        out_ref[:, t * H:(t + 1) * H] = h.astype(out_ref.dtype)
    h_scr[...] = h


def _pick_time_chunk(T, max_chunk=32):
    tc = 1
    for d in range(1, min(T, max_chunk) + 1):
        if T % d == 0:
            tc = d
    return tc


def ugrnn_sequence(xs, h0, W1, W2, U1, U2, bias_gate, bias_update,
                   W=None, U=None, *, time_chunk=None, mxu_dtype=jnp.bfloat16):
    """Run T UGRNN steps in one fused Pallas kernel.  Returns hs [T, B, H] (f32)."""
    # TODO(synk): low-rank (wRank/uRank) factors are folded into effective
    # full-rank weights once here (time-invariant); mathematically identical to
    # the per-step (x @ W) @ Wi formulation, but FP rounding order differs.
    if W is not None:
        W1 = W @ W1
        W2 = W @ W2
    if U is not None:
        U1 = U @ U1
        U2 = U @ U2

    T, B, I = xs.shape
    H = h0.shape[1]
    Tc = _pick_time_chunk(T) if time_chunk is None else time_chunk
    assert T % Tc == 0, "time_chunk must divide T"

    # Fused gate|update weights: 2 dots/step instead of 4; bf16 storage halves
    # weight DMA bytes / VMEM residency and hits native MXU rate.  Accumulation
    # (preferred_element_type) and all elementwise gate math stay f32.
    Wx = jnp.concatenate([W1, W2], axis=1).astype(mxu_dtype)            # (I, 2H)
    Wh = jnp.concatenate([U1, U2], axis=1).astype(mxu_dtype)            # (H, 2H)
    Bc = jnp.concatenate([bias_gate, bias_update], axis=1).astype(jnp.float32)

    xs2d = xs.reshape(T * B, I).astype(mxu_dtype)   # chunk rows are contiguous
    h0f = h0.astype(jnp.float32)

    flops = T * (2 * B * I * 2 * H + 2 * B * H * 2 * H + 8 * B * H)
    bytes_accessed = (xs2d.size * xs2d.dtype.itemsize
                      + h0f.size * 4
                      + Wx.size * Wx.dtype.itemsize
                      + Wh.size * Wh.dtype.itemsize
                      + Bc.size * 4
                      + T * B * H * 4)
    cost = pl.CostEstimate(flops=flops, transcendentals=T * 2 * B * H,
                           bytes_accessed=bytes_accessed)

    grid_spec = pltpu.PrefetchScalarGridSpec(
        num_scalar_prefetch=0,
        grid=(T // Tc,),                                   # chunked time axis
        in_specs=[
            pl.BlockSpec((Tc * B, I), lambda c: (c, 0)),   # x chunk
            pl.BlockSpec((B, H), lambda c: (0, 0)),        # h0 (chunk 0 only)
            pl.BlockSpec((I, 2 * H), lambda c: (0, 0)),    # Wx, VMEM-resident
            pl.BlockSpec((H, 2 * H), lambda c: (0, 0)),    # Wh, VMEM-resident
            pl.BlockSpec((1, 2 * H), lambda c: (0, 0)),    # biases, VMEM-resident
        ],
        out_specs=pl.BlockSpec((None, B, Tc * H), lambda c: (c, 0, 0)),
        scratch_shapes=[pltpu.VMEM((B, H), jnp.float32)],  # carried hidden state
    )

    slab = pl.pallas_call(
        _ugrnn_chunk_kernel,
        out_shape=jax.ShapeDtypeStruct((T // Tc, B, Tc * H), jnp.float32),
        grid_spec=grid_spec,
        compiler_params=pltpu.CompilerParams(
            dimension_semantics=("arbitrary",)),           # recurrence is sequential
        cost_estimate=cost,
    )(xs2d, h0f, Wx, Wh, Bc)

    # (T//Tc, B, Tc*H) -> (T, B, H)
    hs = slab.reshape(T // Tc, B, Tc, H).transpose(0, 2, 1, 3).reshape(T, B, H)
    return hs


def ugrnn_cell(x, h, W1, W2, U1, U2, bias_gate, bias_update, W=None, U=None,
               *, mxu_dtype=jnp.bfloat16):
    """Single-step forward matching the module's forward(input, state)."""
    hs = ugrnn_sequence(x[None], h, W1, W2, U1, U2, bias_gate, bias_update,
                        W=W, U=U, time_chunk=1, mxu_dtype=mxu_dtype)
    return hs[0]


if __name__ == "__main__":
    T, B, I, H = 8, 8, 16, 32
    key = jax.random.PRNGKey(0)
    ks = jax.random.split(key, 6)

    xs = jax.random.normal(ks[0], (T, B, I), dtype=jnp.float32)
    h0 = jax.random.normal(ks[1], (B, H), dtype=jnp.float32)

    # Parameter shapes / init matching UGRNNLRCell.__init__ (full-rank path).
    W1 = 0.1 * jax.random.normal(ks[2], (I, H), dtype=jnp.float32)
    W2 = 0.1 * jax.random.normal(ks[3], (I, H), dtype=jnp.float32)
    U1 = 0.1 * jax.random.normal(ks[4], (H, H), dtype=jnp.float32)
    U2 = 0.1 * jax.random.normal(ks[5], (H, H), dtype=jnp.float32)
    bias_gate = jnp.ones((1, H), dtype=jnp.float32)
    bias_update = jnp.ones((1, H), dtype=jnp.float32)

    def ref_sequence(emulate_bf16_inputs):
        cast = ((lambda a: a.astype(jnp.bfloat16).astype(jnp.float32))
                if emulate_bf16_inputs else (lambda a: a))
        W1c, W2c, U1c, U2c = cast(W1), cast(W2), cast(U1), cast(U2)
        h = h0
        outs = []
        for t in range(T):
            x = cast(xs[t])
            hc = cast(h)
            z = jax.nn.sigmoid(x @ W1c + hc @ U1c + bias_gate)
            c = jnp.tanh(x @ W2c + hc @ U2c + bias_update)
            h = z * h + (1.0 - z) * c
            outs.append(h)
        return jnp.stack(outs)

    # Exact module-semantics check (f32 MXU operands).
    hs_f32 = jax.block_until_ready(
        ugrnn_sequence(xs, h0, W1, W2, U1, U2, bias_gate, bias_update,
                       mxu_dtype=jnp.float32))
    assert hs_f32.shape == (T, B, H)
    assert jnp.allclose(hs_f32, ref_sequence(False), atol=1e-4, rtol=1e-4), \
        "f32 sequence mismatch vs reference"

    # Performance path: bf16 MXU operands, f32 accumulation + f32 h carry.
    # Compared against a reference that applies the same bf16 input rounding.
    hs_bf16 = jax.block_until_ready(
        ugrnn_sequence(xs, h0, W1, W2, U1, U2, bias_gate, bias_update,
                       mxu_dtype=jnp.bfloat16))
    assert jnp.allclose(hs_bf16, ref_sequence(True), atol=1e-3, rtol=1e-3), \
        "bf16 sequence mismatch vs bf16-input-emulated reference"

    # Single-step path (exact module forward semantics).
    h1 = jax.block_until_ready(
        ugrnn_cell(xs[0], h0, W1, W2, U1, U2, bias_gate, bias_update,
                   mxu_dtype=jnp.float32))
    z0 = jax.nn.sigmoid(xs[0] @ W1 + h0 @ U1 + bias_gate)
    c0 = jnp.tanh(xs[0] @ W2 + h0 @ U2 + bias_update)
    ref1 = z0 * h0 + (1.0 - z0) * c0
    assert jnp.allclose(h1, ref1, atol=1e-4, rtol=1e-4), "single-step mismatch"

    print("KERNEL_OK")
</pallas_src>

<mosaic_0001>
module attributes {stable_mosaic.version = 11 : i64} {
  func.func @_ugrnn_chunk_kernel(%arg0: i32, %arg1: memref<64x16xf32, #tpu.memory_space<vmem>>, %arg2: memref<8x32xf32, #tpu.memory_space<vmem>>, %arg3: memref<16x64xf32, #tpu.memory_space<vmem>>, %arg4: memref<32x64xf32, #tpu.memory_space<vmem>>, %arg5: memref<1x64xf32, #tpu.memory_space<vmem>>, %arg6: memref<1x8x256xf32, #tpu.memory_space<vmem>>, %arg7: memref<8x32xf32, #tpu.memory_space<vmem>>) attributes {dimension_semantics = [#tpu.dimension_semantics<arbitrary>], iteration_bounds = array<i64: 1>, scalar_prefetch = 0 : i64, scratch_operands = 1 : i64, tpu.core_type = #tpu.core_type<tc>, window_params = [{transform_indices = @transform_0, window_bounds = array<i64: 64, 16>}, {pipeline_mode = #tpu.pipeline_mode<synchronous>, transform_indices = @transform_1, window_bounds = array<i64: 8, 32>}, {pipeline_mode = #tpu.pipeline_mode<synchronous>, transform_indices = @transform_2, window_bounds = array<i64: 16, 64>}, {pipeline_mode = #tpu.pipeline_mode<synchronous>, transform_indices = @transform_3, window_bounds = array<i64: 32, 64>}, {pipeline_mode = #tpu.pipeline_mode<synchronous>, transform_indices = @transform_4, window_bounds = array<i64: 1, 64>}, {transform_indices = @transform_5, window_bounds = array<i64: 1, 8, 256>}]} {
    %c0_i32 = arith.constant 0 : i32
    %0 = arith.cmpi eq, %arg0, %c0_i32 : i32
    %1 = arith.extui %0 : i1 to i32
    %c0_i32_0 = arith.constant 0 : i32
    %2 = arith.cmpi ne, %1, %c0_i32_0 : i32
    scf.if %2 {
      %c0_53 = arith.constant 0 : index
      %c0_54 = arith.constant 0 : index
      %164 = vector.load %arg2[%c0_53, %c0_54] : memref<8x32xf32, #tpu.memory_space<vmem>>, vector<8x32xf32>
      %c0_55 = arith.constant 0 : index
      %c0_56 = arith.constant 0 : index
      %165 = vector.load %arg7[%c0_55, %c0_56] : memref<8x32xf32, #tpu.memory_space<vmem>>, vector<8x32xf32>
      tpu.vector_store %arg7[%c0_55, %c0_56], %164 {strides = array<i32>} : memref<8x32xf32, #tpu.memory_space<vmem>>, vector<8x32xf32>,
    } else {
    }
    %c0 = arith.constant 0 : index
    %c0_1 = arith.constant 0 : index
    %3 = vector.load %arg1[%c0, %c0_1] : memref<64x16xf32, #tpu.memory_space<vmem>>, vector<64x16xf32>
    %c0_2 = arith.constant 0 : index
    %c0_3 = arith.constant 0 : index
    %4 = vector.load %arg3[%c0_2, %c0_3] : memref<16x64xf32, #tpu.memory_space<vmem>>, vector<16x64xf32>
    %cst = arith.constant dense<0.000000e+00> : vector<64x64xf32>
    %5 = tpu.matmul %3, %4, %cst {dimension_numbers = #tpu.dot_dimension_numbers<[1], [0], [0], [1], [0, 0, 1, 1], [], []>} : vector<64x16xf32>, vector<16x64xf32>, vector<64x64xf32> -> vector<64x64xf32>
    %c0_4 = arith.constant 0 : index
    %c0_5 = arith.constant 0 : index
    %6 = vector.load %arg5[%c0_4, %c0_5] : memref<1x64xf32, #tpu.memory_space<vmem>>, vector<1x64xf32>
    %7 = vector.broadcast %6 : vector<1x64xf32> to vector<64x64xf32>
    %8 = arith.addf %5, %7 : vector<64x64xf32>
    %c0_6 = arith.constant 0 : index
    %c0_7 = arith.constant 0 : index
    %9 = vector.load %arg7[%c0_6, %c0_7] : memref<8x32xf32, #tpu.memory_space<vmem>>, vector<8x32xf32>
    %c0_8 = arith.constant 0 : index
    %c0_9 = arith.constant 0 : index
    %10 = vector.load %arg4[%c0_8, %c0_9] : memref<32x64xf32, #tpu.memory_space<vmem>>, vector<32x64xf32>
    %11 = vector.extract_strided_slice %8 {offsets = [0, 0], sizes = [8, 64], strides = [1, 1]} : vector<64x64xf32> to vector<8x64xf32>
    %cst_10 = arith.constant dense<0.000000e+00> : vector<8x64xf32>
    %12 = tpu.matmul %9, %10, %cst_10 {dimension_numbers = #tpu.dot_dimension_numbers<[1], [0], [0], [1], [0, 0, 1, 1], [], []>} : vector<8x32xf32>, vector<32x64xf32>, vector<8x64xf32> -> vector<8x64xf32>
    %13 = arith.addf %11, %12 : vector<8x64xf32>
    %14 = vector.extract_strided_slice %13 {offsets = [0, 0], sizes = [8, 32], strides = [1, 1]} : vector<8x64xf32> to vector<8x32xf32>
    %15 = arith.negf %14 : vector<8x32xf32>
    %16 = math.exp %15 : vector<8x32xf32>
    %cst_11 = arith.constant 1.000000e+00 : f32
    %17 = vector.broadcast %cst_11 : f32 to vector<8x32xf32>
    %18 = arith.addf %17, %16 : vector<8x32xf32>
    %19 = arith.divf %17, %18 : vector<8x32xf32>
    %20 = vector.extract_strided_slice %13 {offsets = [0, 32], sizes = [8, 32], strides = [1, 1]} : vector<8x64xf32> to vector<8x32xf32>
    %21 = math.tanh %20 : vector<8x32xf32>
    %22 = arith.mulf %19, %9 : vector<8x32xf32>
    %cst_12 = arith.constant 1.000000e+00 : f32
    %23 = vector.broadcast %cst_12 : f32 to vector<8x32xf32>
    %24 = arith.subf %23, %19 : vector<8x32xf32>
    %25 = arith.mulf %24, %21 : vector<8x32xf32>
    %26 = arith.addf %22, %25 : vector<8x32xf32>
    %c0_13 = arith.constant 0 : index
    %c0_14 = arith.constant 0 : index
    %c0_15 = arith.constant 0 : index
    %27 = vector.load %arg6[%c0_13, %c0_14, %c0_15] : memref<1x8x256xf32, #tpu.memory_space<vmem>>, vector<1x8x32xf32>
    %28 = vector.shape_cast %27 : vector<1x8x32xf32> to vector<8x32xf32>
    %29 = vector.shape_cast %26 : vector<8x32xf32> to vector<1x8x32xf32>
    tpu.vector_store %arg6[%c0_13, %c0_14, %c0_15], %29 {strides = array<i32>} : memref<1x8x256xf32, #tpu.memory_space<vmem>>, vector<1x8x32xf32>,
    %30 = vector.extract_strided_slice %8 {offsets = [8, 0], sizes = [8, 64], strides = [1, 1]} : vector<64x64xf32> to vector<8x64xf32>
    %cst_16 = arith.constant dense<0.000000e+00> : vector<8x64xf32>
    %31 = tpu.matmul %26, %10, %cst_16 {dimension_numbers = #tpu.dot_dimension_numbers<[1], [0], [0], [1], [0, 0, 1, 1], [], []>} : vector<8x32xf32>, vector<32x64xf32>, vector<8x64xf32> -> vector<8x64xf32>
    %32 = arith.addf %30, %31 : vector<8x64xf32>
    %33 = vector.extract_strided_slice %32 {offsets = [0, 0], sizes = [8, 32], strides = [1, 1]} : vector<8x64xf32> to vector<8x32xf32>
    %34 = arith.negf %33 : vector<8x32xf32>
    %35 = math.exp %34 : vector<8x32xf32>
    %cst_17 = arith.constant 1.000000e+00 : f32
    %36 = vector.broadcast %cst_17 : f32 to vector<8x32xf32>
    %37 = arith.addf %36, %35 : vector<8x32xf32>
    %38 = arith.divf %36, %37 : vector<8x32xf32>
    %39 = vector.extract_strided_slice %32 {offsets = [0, 32], sizes = [8, 32], strides = [1, 1]} : vector<8x64xf32> to vector<8x32xf32>
    %40 = math.tanh %39 : vector<8x32xf32>
    %41 = arith.mulf %38, %26 : vector<8x32xf32>
    %cst_18 = arith.constant 1.000000e+00 : f32
    %42 = vector.broadcast %cst_18 : f32 to vector<8x32xf32>
    %43 = arith.subf %42, %38 : vector<8x32xf32>
    %44 = arith.mulf %43, %40 : vector<8x32xf32>
    %45 = arith.addf %41, %44 : vector<8x32xf32>
    %c0_19 = arith.constant 0 : index
    %c0_20 = arith.constant 0 : index
    %c32 = arith.constant 32 : index
    %46 = vector.load %arg6[%c0_19, %c0_20, %c32] : memref<1x8x256xf32, #tpu.memory_space<vmem>>, vector<1x8x32xf32>
    %47 = vector.shape_cast %46 : vector<1x8x32xf32> to vector<8x32xf32>
    %48 = vector.shape_cast %45 : vector<8x32xf32> to vector<1x8x32xf32>
    tpu.vector_store %arg6[%c0_19, %c0_20, %c32], %48 {strides = array<i32>} : memref<1x8x256xf32, #tpu.memory_space<vmem>>, vector<1x8x32xf32>,
    %49 = vector.extract_strided_slice %8 {offsets = [16, 0], sizes = [8, 64], strides = [1, 1]} : vector<64x64xf32> to vector<8x64xf32>
    %cst_21 = arith.constant dense<0.000000e+00> : vector<8x64xf32>
    %50 = tpu.matmul %45, %10, %cst_21 {dimension_numbers = #tpu.dot_dimension_numbers<[1], [0], [0], [1], [0, 0, 1, 1], [], []>} : vector<8x32xf32>, vector<32x64xf32>, vector<8x64xf32> -> vector<8x64xf32>
    %51 = arith.addf %49, %50 : vector<8x64xf32>
    %52 = vector.extract_strided_slice %51 {offsets = [0, 0], sizes = [8, 32], strides = [1, 1]} : vector<8x64xf32> to vector<8x32xf32>
    %53 = arith.negf %52 : vector<8x32xf32>
    %54 = math.exp %53 : vector<8x32xf32>
    %cst_22 = arith.constant 1.000000e+00 : f32
    %55 = vector.broadcast %cst_22 : f32 to vector<8x32xf32>
    %56 = arith.addf %55, %54 : vector<8x32xf32>
    %57 = arith.divf %55, %56 : vector<8x32xf32>
    %58 = vector.extract_strided_slice %51 {offsets = [0, 32], sizes = [8, 32], strides = [1, 1]} : vector<8x64xf32> to vector<8x32xf32>
    %59 = math.tanh %58 : vector<8x32xf32>
    %60 = arith.mulf %57, %45 : vector<8x32xf32>
    %cst_23 = arith.constant 1.000000e+00 : f32
    %61 = vector.broadcast %cst_23 : f32 to vector<8x32xf32>
    %62 = arith.subf %61, %57 : vector<8x32xf32>
    %63 = arith.mulf %62, %59 : vector<8x32xf32>
    %64 = arith.addf %60, %63 : vector<8x32xf32>
    %c0_24 = arith.constant 0 : index
    %c0_25 = arith.constant 0 : index
    %c64 = arith.constant 64 : index
    %65 = vector.load %arg6[%c0_24, %c0_25, %c64] : memref<1x8x256xf32, #tpu.memory_space<vmem>>, vector<1x8x32xf32>
    %66 = vector.shape_cast %65 : vector<1x8x32xf32> to vector<8x32xf32>
    %67 = vector.shape_cast %64 : vector<8x32xf32> to vector<1x8x32xf32>
    tpu.vector_store %arg6[%c0_24, %c0_25, %c64], %67 {strides = array<i32>} : memref<1x8x256xf32, #tpu.memory_space<vmem>>, vector<1x8x32xf32>,
    %68 = vector.extract_strided_slice %8 {offsets = [24, 0], sizes = [8, 64], strides = [1, 1]} : vector<64x64xf32> to vector<8x64xf32>
    %cst_26 = arith.constant dense<0.000000e+00> : vector<8x64xf32>
    %69 = tpu.matmul %64, %10, %cst_26 {dimension_numbers = #tpu.dot_dimension_numbers<[1], [0], [0], [1], [0, 0, 1, 1], [], []>} : vector<8x32xf32>, vector<32x64xf32>, vector<8x64xf32> -> vector<8x64xf32>
    %70 = arith.addf %68, %69 : vector<8x64xf32>
    %71 = vector.extract_strided_slice %70 {offsets = [0, 0], sizes = [8, 32], strides = [1, 1]} : vector<8x64xf32> to vector<8x32xf32>
    %72 = arith.negf %71 : vector<8x32xf32>
    %73 = math.exp %72 : vector<8x32xf32>
    %cst_27 = arith.constant 1.000000e+00 : f32
    %74 = vector.broadcast %cst_27 : f32 to vector<8x32xf32>
    %75 = arith.addf %74, %73 : vector<8x32xf32>
    %76 = arith.divf %74, %75 : vector<8x32xf32>
    %77 = vector.extract_strided_slice %70 {offsets = [0, 32], sizes = [8, 32], strides = [1, 1]} : vector<8x64xf32> to vector<8x32xf32>
    %78 = math.tanh %77 : vector<8x32xf32>
    %79 = arith.mulf %76, %64 : vector<8x32xf32>
    %cst_28 = arith.constant 1.000000e+00 : f32
    %80 = vector.broadcast %cst_28 : f32 to vector<8x32xf32>
    %81 = arith.subf %80, %76 : vector<8x32xf32>
    %82 = arith.mulf %81, %78 : vector<8x32xf32>
    %83 = arith.addf %79, %82 : vector<8x32xf32>
    %c0_29 = arith.constant 0 : index
    %c0_30 = arith.constant 0 : index
    %c96 = arith.constant 96 : index
    %84 = vector.load %arg6[%c0_29, %c0_30, %c96] : memref<1x8x256xf32, #tpu.memory_space<vmem>>, vector<1x8x32xf32>
    %85 = vector.shape_cast %84 : vector<1x8x32xf32> to vector<8x32xf32>
    %86 = vector.shape_cast %83 : vector<8x32xf32> to vector<1x8x32xf32>
    tpu.vector_store %arg6[%c0_29, %c0_30, %c96], %86 {strides = array<i32>} : memref<1x8x256xf32, #tpu.memory_space<vmem>>, vector<1x8x32xf32>,
    %87 = vector.extract_strided_slice %8 {offsets = [32, 0], sizes = [8, 64], strides = [1, 1]} : vector<64x64xf32> to vector<8x64xf32>
    %cst_31 = arith.constant dense<0.000000e+00> : vector<8x64xf32>
    %88 = tpu.matmul %83, %10, %cst_31 {dimension_numbers = #tpu.dot_dimension_numbers<[1], [0], [0], [1], [0, 0, 1, 1], [], []>} : vector<8x32xf32>, vector<32x64xf32>, vector<8x64xf32> -> vector<8x64xf32>
    %89 = arith.addf %87, %88 : vector<8x64xf32>
    %90 = vector.extract_strided_slice %89 {offsets = [0, 0], sizes = [8, 32], strides = [1, 1]} : vector<8x64xf32> to vector<8x32xf32>
    %91 = arith.negf %90 : vector<8x32xf32>
    %92 = math.exp %91 : vector<8x32xf32>
    %cst_32 = arith.constant 1.000000e+00 : f32
    %93 = vector.broadcast %cst_32 : f32 to vector<8x32xf32>
    %94 = arith.addf %93, %92 : vector<8x32xf32>
    %95 = arith.divf %93, %94 : vector<8x32xf32>
    %96 = vector.extract_strided_slice %89 {offsets = [0, 32], sizes = [8, 32], strides = [1, 1]} : vector<8x64xf32> to vector<8x32xf32>
    %97 = math.tanh %96 : vector<8x32xf32>
    %98 = arith.mulf %95, %83 : vector<8x32xf32>
    %cst_33 = arith.constant 1.000000e+00 : f32
    %99 = vector.broadcast %cst_33 : f32 to vector<8x32xf32>
    %100 = arith.subf %99, %95 : vector<8x32xf32>
    %101 = arith.mulf %100, %97 : vector<8x32xf32>
    %102 = arith.addf %98, %101 : vector<8x32xf32>
    %c0_34 = arith.constant 0 : index
    %c0_35 = arith.constant 0 : index
    %c128 = arith.constant 128 : index
    %103 = vector.load %arg6[%c0_34, %c0_35, %c128] : memref<1x8x256xf32, #tpu.memory_space<vmem>>, vector<1x8x32xf32>
    %104 = vector.shape_cast %103 : vector<1x8x32xf32> to vector<8x32xf32>
    %105 = vector.shape_cast %102 : vector<8x32xf32> to vector<1x8x32xf32>
    tpu.vector_store %arg6[%c0_34, %c0_35, %c128], %105 {strides = array<i32>} : memref<1x8x256xf32, #tpu.memory_space<vmem>>, vector<1x8x32xf32>,
    %106 = vector.extract_strided_slice %8 {offsets = [40, 0], sizes = [8, 64], strides = [1, 1]} : vector<64x64xf32> to vector<8x64xf32>
    %cst_36 = arith.constant dense<0.000000e+00> : vector<8x64xf32>
    %107 = tpu.matmul %102, %10, %cst_36 {dimension_numbers = #tpu.dot_dimension_numbers<[1], [0], [0], [1], [0, 0, 1, 1], [], []>} : vector<8x32xf32>, vector<32x64xf32>, vector<8x64xf32> -> vector<8x64xf32>
    %108 = arith.addf %106, %107 : vector<8x64xf32>
    %109 = vector.extract_strided_slice %108 {offsets = [0, 0], sizes = [8, 32], strides = [1, 1]} : vector<8x64xf32> to vector<8x32xf32>
    %110 = arith.negf %109 : vector<8x32xf32>
    %111 = math.exp %110 : vector<8x32xf32>
    %cst_37 = arith.constant 1.000000e+00 : f32
    %112 = vector.broadcast %cst_37 : f32 to vector<8x32xf32>
    %113 = arith.addf %112, %111 : vector<8x32xf32>
    %114 = arith.divf %112, %113 : vector<8x32xf32>
    %115 = vector.extract_strided_slice %108 {offsets = [0, 32], sizes = [8, 32], strides = [1, 1]} : vector<8x64xf32> to vector<8x32xf32>
    %116 = math.tanh %115 : vector<8x32xf32>
    %117 = arith.mulf %114, %102 : vector<8x32xf32>
    %cst_38 = arith.constant 1.000000e+00 : f32
    %118 = vector.broadcast %cst_38 : f32 to vector<8x32xf32>
    %119 = arith.subf %118, %114 : vector<8x32xf32>
    %120 = arith.mulf %119, %116 : vector<8x32xf32>
    %121 = arith.addf %117, %120 : vector<8x32xf32>
    %c0_39 = arith.constant 0 : index
    %c0_40 = arith.constant 0 : index
    %c160 = arith.constant 160 : index
    %122 = vector.load %arg6[%c0_39, %c0_40, %c160] : memref<1x8x256xf32, #tpu.memory_space<vmem>>, vector<1x8x32xf32>
    %123 = vector.shape_cast %122 : vector<1x8x32xf32> to vector<8x32xf32>
    %124 = vector.shape_cast %121 : vector<8x32xf32> to vector<1x8x32xf32>
    tpu.vector_store %arg6[%c0_39, %c0_40, %c160], %124 {strides = array<i32>} : memref<1x8x256xf32, #tpu.memory_space<vmem>>, vector<1x8x32xf32>,
    %125 = vector.extract_strided_slice %8 {offsets = [48, 0], sizes = [8, 64], strides = [1, 1]} : vector<64x64xf32> to vector<8x64xf32>
    %cst_41 = arith.constant dense<0.000000e+00> : vector<8x64xf32>
    %126 = tpu.matmul %121, %10, %cst_41 {dimension_numbers = #tpu.dot_dimension_numbers<[1], [0], [0], [1], [0, 0, 1, 1], [], []>} : vector<8x32xf32>, vector<32x64xf32>, vector<8x64xf32> -> vector<8x64xf32>
    %127 = arith.addf %125, %126 : vector<8x64xf32>
    %128 = vector.extract_strided_slice %127 {offsets = [0, 0], sizes = [8, 32], strides = [1, 1]} : vector<8x64xf32> to vector<8x32xf32>
    %129 = arith.negf %128 : vector<8x32xf32>
    %130 = math.exp %129 : vector<8x32xf32>
    %cst_42 = arith.constant 1.000000e+00 : f32
    %131 = vector.broadcast %cst_42 : f32 to vector<8x32xf32>
    %132 = arith.addf %131, %130 : vector<8x32xf32>
    %133 = arith.divf %131, %132 : vector<8x32xf32>
    %134 = vector.extract_strided_slice %127 {offsets = [0, 32], sizes = [8, 32], strides = [1, 1]} : vector<8x64xf32> to vector<8x32xf32>
    %135 = math.tanh %134 : vector<8x32xf32>
    %136 = arith.mulf %133, %121 : vector<8x32xf32>
    %cst_43 = arith.constant 1.000000e+00 : f32
    %137 = vector.broadcast %cst_43 : f32 to vector<8x32xf32>
    %138 = arith.subf %137, %133 : vector<8x32xf32>
    %139 = arith.mulf %138, %135 : vector<8x32xf32>
    %140 = arith.addf %136, %139 : vector<8x32xf32>
    %c0_44 = arith.constant 0 : index
    %c0_45 = arith.constant 0 : index
    %c192 = arith.constant 192 : index
    %141 = vector.load %arg6[%c0_44, %c0_45, %c192] : memref<1x8x256xf32, #tpu.memory_space<vmem>>, vector<1x8x32xf32>
    %142 = vector.shape_cast %141 : vector<1x8x32xf32> to vector<8x32xf32>
    %143 = vector.shape_cast %140 : vector<8x32xf32> to vector<1x8x32xf32>
    tpu.vector_store %arg6[%c0_44, %c0_45, %c192], %143 {strides = array<i32>} : memref<1x8x256xf32, #tpu.memory_space<vmem>>, vector<1x8x32xf32>,
    %144 = vector.extract_strided_slice %8 {offsets = [56, 0], sizes = [8, 64], strides = [1, 1]} : vector<64x64xf32> to vector<8x64xf32>
    %cst_46 = arith.constant dense<0.000000e+00> : vector<8x64xf32>
    %145 = tpu.matmul %140, %10, %cst_46 {dimension_numbers = #tpu.dot_dimension_numbers<[1], [0], [0], [1], [0, 0, 1, 1], [], []>} : vector<8x32xf32>, vector<32x64xf32>, vector<8x64xf32> -> vector<8x64xf32>
    %146 = arith.addf %144, %145 : vector<8x64xf32>
    %147 = vector.extract_strided_slice %146 {offsets = [0, 0], sizes = [8, 32], strides = [1, 1]} : vector<8x64xf32> to vector<8x32xf32>
    %148 = arith.negf %147 : vector<8x32xf32>
    %149 = math.exp %148 : vector<8x32xf32>
    %cst_47 = arith.constant 1.000000e+00 : f32
    %150 = vector.broadcast %cst_47 : f32 to vector<8x32xf32>
    %151 = arith.addf %150, %149 : vector<8x32xf32>
    %152 = arith.divf %150, %151 : vector<8x32xf32>
    %153 = vector.extract_strided_slice %146 {offsets = [0, 32], sizes = [8, 32], strides = [1, 1]} : vector<8x64xf32> to vector<8x32xf32>
    %154 = math.tanh %153 : vector<8x32xf32>
    %155 = arith.mulf %152, %140 : vector<8x32xf32>
    %cst_48 = arith.constant 1.000000e+00 : f32
    %156 = vector.broadcast %cst_48 : f32 to vector<8x32xf32>
    %157 = arith.subf %156, %152 : vector<8x32xf32>
    %158 = arith.mulf %157, %154 : vector<8x32xf32>
    %159 = arith.addf %155, %158 : vector<8x32xf32>
    %c0_49 = arith.constant 0 : index
    %c0_50 = arith.constant 0 : index
    %c224 = arith.constant 224 : index
    %160 = vector.load %arg6[%c0_49, %c0_50, %c224] : memref<1x8x256xf32, #tpu.memory_space<vmem>>, vector<1x8x32xf32>
    %161 = vector.shape_cast %160 : vector<1x8x32xf32> to vector<8x32xf32>
    %162 = vector.shape_cast %159 : vector<8x32xf32> to vector<1x8x32xf32>
    tpu.vector_store %arg6[%c0_49, %c0_50, %c224], %162 {strides = array<i32>} : memref<1x8x256xf32, #tpu.memory_space<vmem>>, vector<1x8x32xf32>,
    %c0_51 = arith.constant 0 : index
    %c0_52 = arith.constant 0 : index
    %163 = vector.load %arg7[%c0_51, %c0_52] : memref<8x32xf32, #tpu.memory_space<vmem>>, vector<8x32xf32>
    tpu.vector_store %arg7[%c0_51, %c0_52], %159 {strides = array<i32>} : memref<8x32xf32, #tpu.memory_space<vmem>>, vector<8x32xf32>,
    return
  }
  func.func @transform_0(%arg0: i32) -> (i32, i32) {
    %c0_i32 = arith.constant 0 : i32
    %c0_i32_0 = arith.constant 0 : i32
    return %arg0, %c0_i32 : i32, i32
  }
  func.func @transform_1(%arg0: i32) -> (i32, i32) {
    %c0_i32 = arith.constant 0 : i32
    %c0_i32_0 = arith.constant 0 : i32
    %c0_i32_1 = arith.constant 0 : i32
    return %c0_i32, %c0_i32_0 : i32, i32
  }
  func.func @transform_2(%arg0: i32) -> (i32, i32) {
    %c0_i32 = arith.constant 0 : i32
    %c0_i32_0 = arith.constant 0 : i32
    %c0_i32_1 = arith.constant 0 : i32
    return %c0_i32, %c0_i32_0 : i32, i32
  }
  func.func @transform_3(%arg0: i32) -> (i32, i32) {
    %c0_i32 = arith.constant 0 : i32
    %c0_i32_0 = arith.constant 0 : i32
    %c0_i32_1 = arith.constant 0 : i32
    return %c0_i32, %c0_i32_0 : i32, i32
  }
  func.func @transform_4(%arg0: i32) -> (i32, i32) {
    %c0_i32 = arith.constant 0 : i32
    %c0_i32_0 = arith.constant 0 : i32
    %c0_i32_1 = arith.constant 0 : i32
    return %c0_i32, %c0_i32_0 : i32, i32
  }
  func.func @transform_5(%arg0: i32) -> (i32, i32, i32) {
    %c0_i32 = arith.constant 0 : i32
    %c0_i32_0 = arith.constant 0 : i32
    %c0_i32_1 = arith.constant 0 : i32
    return %arg0, %c0_i32, %c0_i32_0 : i32, i32, i32
  }
}

</mosaic_0001>

<bundles_post_ra>
// kernel: tpu_custom_call.1
= control target key start
LH: loop header
LB: loop body
LE: loop exit
PB: predicated region body
PF: predicated region fallthrough
CT: control target
= control target key end

     0   :  { %vm45_vm0 = vcmask 130048   ;;  %v1248_v3 = vmov 0.0|0.0   ;;  %vm26_vm1 = vcmask 261120   ;;  %vm1249_vm2 = vmmov 0   ;;  %s1469_s0 = inlined_call_operand.vmem [shape: f32[64,16], index: 0, kind: input, shape index: {}]   ;;  %s1470_s1 = inlined_call_operand.vmem [shape: f32[8,32], index: 1, kind: input, shape index: {}]   ;;  %s1471_s2 = inlined_call_operand.vmem [shape: f32[16,64], index: 2, kind: input, shape index: {}]   ;;  %s1472_s3 = inlined_call_operand.vmem [shape: f32[32,64], index: 3, kind: input, shape index: {}]   ;;  %s1473_s4 = inlined_call_operand.vmem [shape: f32[1,64], index: 4, kind: input, shape index: {}]   ;;  %s1474_s5 = inlined_call_operand.hbm [shape: f32[1,8,256], index: 5, kind: output, shape index: {}]  }
   0x1   :  { %v36_v0 = vld [vmem:[%s1471_s2] sm:$0xff]  ;;  %v37_v1 = vld [vmem:[%s1471_s2 + $0x8] sm:$0xff]  ;;  %1121 = vmatprep.subr.bf16.mxu1 %v1248_v3  ;;  %v178_v8 = vld [vmem:[%s1472_s3 + $0x10] sm:$0xff]  ;;  %v1250_v10 = vmov 0.0  }
   0x2   :  { %v176_v2 = vld [vmem:[%s1472_s3] sm:$0xff]  ;;  %v1117_v4 = vpack.c.bf16 %v37_v1, %v36_v0  ;;  %v177_v5 = vld [vmem:[%s1472_s3 + $0x8] sm:$0xff]  ;;  %v179_v9 = vld [vmem:[%s1472_s3 + $0x18] sm:$0xff]  ;;  %1037 = vmatprep.mubr.msk.f32.mxu1 %vm1249_vm2, %v1250_v10 }
   0x3   :  { %v28_v6 = vld [vmem:[%s1469_s0] sm:$0xff]  ;;  %v1301_v7 = vpack.c.bf16 %v177_v5, %v176_v2 }
   0x4   :  { %1017 = vmatprep.mubr.msk.f32.mxu0 %vm45_vm0, %v28_v6  ;;  %v25_v11 = vld [vmem:[%s1470_s1] sm:$0xff]  ;;  %1118 = vmatprep.subr.bf16.mxu0 %v1117_v4 }
   0x5   :  { %27 = vst.msk [vmem:[#allocation2] sm:$0xff] %vm26_vm1, %v25_v11 }
   0x6   :  { %10 = vsyncpa [#allocation4], 0  ;;  %1123 = vmatpush3.bf16.msra.mxu1 %v1301_v7  ;;  %1120 = vmatpush3.bf16.msra.mxu0 %v1117_v4  ;;  %v29_v12 = vld [vmem:[%s1469_s0 + $0x8] sm:$0xff]  ;;  %v1320_v13 = vpack.c.bf16 %v179_v9, %v178_v8  ;;  %v1341_v15 = vld [vmem:[%s1473_s4] ss:$0 sm:$0xff]  ;;  %s1251_s10 = smov 96  }
   0x7   :  { %1124 = vmatprep.subr.bf16.mxu1 %v1248_v3  ;;  %1133 = vmatprep.subr.bf16.mxu0 %v1248_v3  ;;  %v30_v32 = vld [vmem:[%s1469_s0 + $0x10] sm:$0xff]  ;;  %v31_v33 = vld [vmem:[%s1469_s0 + $0x18] sm:$0xff]  ;;  %v32_v34 = vld [vmem:[%s1469_s0 + $0x20] sm:$0xff]  ;;  %s1253_s22 = smov 64   ;;  %vm364_vm3 = vcmask 523520   ;;  %vm458_vm4 = vcmask 785920  }
   0x8   :  { %v33_v35 = vld [vmem:[%s1469_s0 + $0x28] sm:$0xff]  ;;  %v34_v36 = vld [vmem:[%s1469_s0 + $0x30] sm:$0xff]  ;;  %v35_v37 = vld [vmem:[%s1469_s0 + $0x38] sm:$0xff]  ;;  %s1252_s0 = smov 32   ;;  %vm552_vm5 = vcmask 1048320   ;;  %s1254_s23 = smov [#allocation3]  }
   0x9   :  { %1018 = vmatmul.mubr.msk.f32.vlgmr.msra.gmra.mrb[0].mxu0 %vm45_vm0, %v29_v12  ;;  %s930_s24 = sshll.u32 %s1254_s23, 4  ;;  %s931_s24 = int_to_ptr.vmem [resolvable:$true] %s930_s24 }
   0xa   :  { %1126 = vmatpush3.bf16.msra.mxu1 %v1320_v13  ;;  %1135 = vmatpush3.bf16.msra.mxu0 %v1301_v7  ;;  %s1224_s25 = scalar_lea.vmem %s931_s24, 256  ;;  %p1229_p1 = scmp.lt.s32.totalorder %s931_s24, %s931_s24 }
   0xb   :  { %1127 = vmatprep.subr.bf16.mxu1 %v1248_v3  ;;  %1136 = vmatprep.subr.bf16.mxu0 %v1248_v3  ;;  %p1225_p0 = scmp.ne.s32.totalorder %s931_s24, %s1224_s25  ;;  %p1230_p2 = scmp.lt.s32.totalorder %s1224_s25, %s1224_s25 }
   0xc   :  { %v175_v14 = vld [vmem:[#allocation2] sm:$0xff]  ;;  %1020 = vmatprep.mubr.msk.f32.mxu0 %vm45_vm0, %v30_v32 }
   0xd   :  { %1038 = vmatmul.mubr.msk.f32.vlgmr.msra.gmra.mrb[0].mxu1 %vm26_vm1, %v175_v14  ;;  %1021 = vmatmul.mubr.msk.f32.gmra.mrb[2].mxu0 %vm45_vm0, %v31_v33  ;;  %p1231_p3 = por %p1230_p2, %p1229_p1 }
   0xe   :  { %1129 = vmatpush3.bf16.msra.mxu1 %v1301_v7  ;;  %1048 = vmatprep.mubr.msk.f32.mxu1 %vm1249_vm2, %v1250_v10 }
   0xf   :  { %1130 = vmatprep.subr.bf16.mxu1 %v1248_v3  ;;  %1138 = vmatpush3.bf16.msra.mxu0 %v1320_v13  ;;  %p1232_p4 = pnand %p1231_p3, %p1225_p0 }
  0x10   :  { %1145 = vmatprep.subr.bf16.mxu0 %v1248_v3  ;;  %1023 = vmatprep.mubr.msk.f32.mxu0 %vm45_vm0, %v32_v34 }
  0x11   :  { %1024 = vmatmul.mubr.msk.f32.gmra.mrb[4].mxu0 %vm45_vm0, %v33_v35 }
  0x12   :  { %1132 = vmatpush3.bf16.msra.mxu1 %v1320_v13  ;;  %1026 = vmatprep.mubr.msk.f32.mxu0 %vm45_vm0, %v34_v36 }
  0x13   :  { %1139 = vmatprep.subr.bf16.mxu1 %v1248_v3 }
  0x15   :  { %1027 = vmatmul.mubr.msk.f32.gmra.mrb[6].mxu0 %vm45_vm0, %v35_v37 }
  0x16   :  { %1059 = vmatprep.mubr.msk.f32.mxu0 %vm1249_vm2, %v1250_v10 }
  0xdc   :  { %v1019_v16 = vpop.f32.mrb[0].mxu0 }
  0xdd   :  { %v136_v17 = vpop.f32.mrb[1].mxu0  ;;  %v142_v38 = vadd.f32 %v1019_v16, %v1341_v15 }
  0xde   :  { %v137_v18 = vadd.f32 %v1341_v15, %v136_v17 }
  0xe0   :  { %v250_v19 = vpop.f32.mrb[0].mxu1  ;;  %v1022_v44 = vpop.f32.mrb[2].mxu0 }
  0xe1   :  { %v254_v20 = vadd.f32 %v250_v19, %v137_v18  ;;  %v1039_v21 = vpop.f32.mrb[1].mxu1  ;;  %v146_v45 = vpop.f32.mrb[3].mxu0  ;;  %v152_v11 = vadd.f32 %v1022_v44, %v1341_v15 }
  0xe2   :  { %v147_v58 = vadd.f32 %v1341_v15, %v146_v45 }
  0xe3   :  { %1176 = vtanh.f32 %v254_v20  ;;  %v948_v23 = vmul.f32 -1.442695, %v254_v20 }
  0xe4   :  { %v1381_v47 = vpop.f32.mrb[4].mxu0 }
  0xe5   :  { %1178 = vpow2.f32 %v948_v23  ;;  %v1383_v48 = vpop.f32.mrb[5].mxu0 }
  0xe8   :  { %v1385_v50 = vpop.f32.mrb[6].mxu0 }
  0xe9   :  { %v1387_v51 = vpop.f32.mrb[7].mxu0 }
  0xed   :  { %v1177_v22 = vpop.eup %1176 }
  0xee   :  { %265 = vrot.lane.b32.xlu0 %v1177_v22, %s1251_s10 }
  0xef   :  { %v1179_v24 = vpop.eup %1178 }
  0xf0   :  { %v258_v25 = vadd.f32 1.0, %v1179_v24 }
  0xf2   :  { %1180 = vrcp.f32 %v258_v25 }
  0xfc   :  { %v1181_v26 = vpop.eup %1180 }
  0xfd   :  { %v263_v27 = vsub.f32 1.0, %v1181_v26  ;;  %v262_v29 = vmul.f32 %v1181_v26, %v175_v14 }
 0x160   :  { %v266_v28 = vpop.permute.xlu0 %265 }
 0x161   :  { %v268_v30 = vmul.f32 %v266_v28, %v263_v27  ;;  %v157_v27 = vadd.f32 %v1341_v15, %v1383_v48 }
 0x163   :  { %v269_v31 = vadd.f32 %v268_v30, %v262_v29 }
 0x165   :  { %270 = vst.msk [vmem:[#allocation3] sm:$0xff] %vm26_vm1, %v269_v31  ;;  %1049 = vmatmul.mubr.msk.f32.vlgmr.msra.gmra.mrb[2].mxu1 %vm26_vm1, %v269_v31 }
 0x166   :  { %1141 = vmatpush3.bf16.msra.mxu1 %v1301_v7  ;;  %1070 = vmatprep.mubr.msk.f32.mxu1 %vm1249_vm2, %v1250_v10 }
 0x167   :  { %1142 = vmatprep.subr.bf16.mxu1 %v1248_v3 }
 0x16a   :  { %1144 = vmatpush3.bf16.msra.mxu1 %v1320_v13 }
 0x16b   :  { %1151 = vmatprep.subr.bf16.mxu1 %v1248_v3 }
 0x238   :  { %v340_v39 = vpop.f32.mrb[2].mxu1 }
 0x239   :  { %v344_v40 = vadd.f32 %v340_v39, %v142_v38  ;;  %v1050_v41 = vpop.f32.mrb[3].mxu1 }
 0x23a   :  { %v162_v41 = vadd.f32 %v1381_v47, %v1341_v15  ;;  %v167_v47 = vadd.f32 %v1341_v15, %v1387_v51 }
 0x23b   :  { %1182 = vtanh.f32 %v344_v40  ;;  %v950_v43 = vmul.f32 -1.442695, %v344_v40 }
 0x23d   :  { %1184 = vpow2.f32 %v950_v43 }
 0x245   :  { %v1183_v42 = vpop.eup %1182 }
 0x246   :  { %355 = vrot.lane.b32.xlu0 %v1183_v42, %s1251_s10 }
 0x247   :  { %v1185_v46 = vpop.eup %1184 }
 0x248   :  { %v348_v49 = vadd.f32 1.0, %v1185_v46 }
 0x24a   :  { %1186 = vrcp.f32 %v348_v49 }
 0x254   :  { %v1187_v52 = vpop.eup %1186 }
 0x255   :  { %v353_v53 = vsub.f32 1.0, %v1187_v52  ;;  %v352_v55 = vmul.f32 %v1187_v52, %v269_v31 }
 0x2b8   :  { %v356_v54 = vpop.permute.xlu0 %355 }
 0x2b9   :  { %v358_v56 = vmul.f32 %v356_v54, %v353_v53 }
 0x2bb   :  { %v1389_v57 = vadd.f32 %v358_v56, %v352_v55 }
 0x2bd   :  { %1060 = vmatmul.mubr.msk.f32.vlgmr.msra.gmra.mrb[8].mxu0 %vm26_vm1, %v1389_v57 }
 0x2be   :  { %1147 = vmatpush3.bf16.msra.mxu0 %v1301_v7  ;;  %1081 = vmatprep.mubr.msk.f32.mxu0 %vm1249_vm2, %v1250_v10 }
 0x2bf   :  { %1148 = vmatprep.subr.bf16.mxu0 %v1248_v3 }
 0x2c2   :  { %1150 = vmatpush3.bf16.msra.mxu0 %v1320_v13 }
 0x2c3   :  { %1157 = vmatprep.subr.bf16.mxu0 %v1248_v3 }
 0x390   :  { %v434_v59 = vpop.f32.mrb[8].mxu0 }
 0x391   :  { %v438_v60 = vadd.f32 %v434_v59, %v147_v58  ;;  %v1061_v61 = vpop.f32.mrb[9].mxu0 }
 0x393   :  { %1188 = vtanh.f32 %v438_v60  ;;  %v952_v63 = vmul.f32 -1.442695, %v438_v60 }
 0x395   :  { %1190 = vpow2.f32 %v952_v63 }
 0x39d   :  { %v1189_v62 = vpop.eup %1188 }
 0x39e   :  { %449 = vrot.lane.b32.xlu1 %v1189_v62, %s1251_s10 }
 0x39f   :  { %v1191_v0 = vpop.eup %1190 }
 0x3a0   :  { %v442_v1 = vadd.f32 1.0, %v1191_v0 }
 0x3a2   :  { %1192 = vrcp.f32 %v442_v1 }
 0x3ac   :  { %v1193_v2 = vpop.eup %1192 }
 0x3ad   :  { %v447_v4 = vsub.f32 1.0, %v1193_v2  ;;  %v446_v6 = vmul.f32 %v1193_v2, %v1389_v57 }
 0x410   :  { %v450_v5 = vpop.permute.xlu1 %449 }
 0x411   :  { %v452_v8 = vmul.f32 %v450_v5, %v447_v4 }
 0x413   :  { %v1402_v9 = vadd.f32 %v452_v8, %v446_v6  ;;  %v172_v6 = vadd.f32 %v1385_v50, %v1341_v15 }
 0x415   :  { %1071 = vmatmul.mubr.msk.f32.vlgmr.msra.gmra.mrb[4].mxu1 %vm26_vm1, %v1402_v9 }
 0x416   :  { %1153 = vmatpush3.bf16.msra.mxu1 %v1301_v7  ;;  %1092 = vmatprep.mubr.msk.f32.mxu1 %vm1249_vm2, %v1250_v10 }
 0x417   :  { %1154 = vmatprep.subr.bf16.mxu1 %v1248_v3 }
 0x41a   :  { %1156 = vmatpush3.bf16.msra.mxu1 %v1320_v13 }
 0x41b   :  { %1163 = vmatprep.subr.bf16.mxu1 %v1248_v3 }
 0x4e8   :  { %v528_v12 = vpop.f32.mrb[4].mxu1 }
 0x4e9   :  { %v532_v14 = vadd.f32 %v528_v12, %v152_v11  ;;  %v1072_v16 = vpop.f32.mrb[5].mxu1 }
 0x4eb   :  { %1194 = vtanh.f32 %v532_v14  ;;  %v954_v18 = vmul.f32 -1.442695, %v532_v14 }
 0x4ed   :  { %1196 = vpow2.f32 %v954_v18 }
 0x4f5   :  { %v1195_v17 = vpop.eup %1194 }
 0x4f6   :  { %543 = vrot.lane.b32.xlu1 %v1195_v17, %s1251_s10 }
 0x4f7   :  { %v1197_v19 = vpop.eup %1196 }
 0x4f8   :  { %v536_v20 = vadd.f32 1.0, %v1197_v19 }
 0x4fa   :  { %1198 = vrcp.f32 %v536_v20 }
 0x504   :  { %v1199_v21 = vpop.eup %1198 }
 0x505   :  { %v541_v22 = vsub.f32 1.0, %v1199_v21  ;;  %v540_v24 = vmul.f32 %v1199_v21, %v1402_v9 }
 0x568   :  { %v544_v23 = vpop.permute.xlu1 %543 }
 0x569   :  { %v546_v25 = vmul.f32 %v544_v23, %v541_v22 }
 0x56b   :  { %v547_v26 = vadd.f32 %v546_v25, %v540_v24 }
 0x56d   :  { %1082 = vmatmul.mubr.msk.f32.vlgmr.msra.gmra.mrb[10].mxu0 %vm26_vm1, %v547_v26 }
 0x56e   :  { %1159 = vmatpush3.bf16.msra.mxu0 %v1301_v7  ;;  %1103 = vmatprep.mubr.msk.f32.mxu0 %vm1249_vm2, %v1250_v10 }
 0x56f   :  { %1160 = vmatprep.subr.bf16.mxu0 %v1248_v3 }
 0x572   :  { %1162 = vmatpush3.bf16.msra.mxu0 %v1320_v13 }
 0x640   :  { %v622_v28 = vpop.f32.mrb[10].mxu0 }
 0x641   :  { %v626_v29 = vadd.f32 %v622_v28, %v157_v27  ;;  %v1083_v30 = vpop.f32.mrb[11].mxu0 }
 0x643   :  { %1200 = vtanh.f32 %v626_v29  ;;  %v956_v32 = vmul.f32 -1.442695, %v626_v29 }
 0x645   :  { %1202 = vpow2.f32 %v956_v32 }
 0x64d   :  { %v1201_v31 = vpop.eup %1200 }
 0x64e   :  { %637 = vrot.lane.b32.xlu0 %v1201_v31, %s1251_s10 }
 0x64f   :  { %v1203_v33 = vpop.eup %1202 }
 0x650   :  { %v630_v34 = vadd.f32 1.0, %v1203_v33 }
 0x652   :  { %1204 = vrcp.f32 %v630_v34 }
 0x65c   :  { %v1205_v35 = vpop.eup %1204 }
 0x65d   :  { %v635_v36 = vsub.f32 1.0, %v1205_v35  ;;  %v634_v38 = vmul.f32 %v1205_v35, %v547_v26 }
 0x6c0   :  { %v638_v37 = vpop.permute.xlu0 %637 }
 0x6c1   :  { %v640_v39 = vmul.f32 %v638_v37, %v635_v36 }
 0x6c3   :  { %v641_v40 = vadd.f32 %v640_v39, %v634_v38 }
 0x6c5   :  { %642 = vst.msk [vmem:[#allocation3 + $0x8] sm:$0xff] %vm26_vm1, %v641_v40  ;;  %1093 = vmatmul.mubr.msk.f32.vlgmr.msra.gmra.mrb[6].mxu1 %vm26_vm1, %v641_v40 }
 0x6c6   :  { %1165 = vmatpush3.bf16.msra.mxu1 %v1301_v7  ;;  %1114 = vmatprep.mubr.msk.f32.mxu1 %vm1249_vm2, %v1250_v10 }
 0x6c7   :  { %1166 = vmatprep.subr.bf16.mxu1 %v1248_v3 }
 0x6ca   :  { %1168 = vmatpush3.bf16.msra.mxu1 %v1320_v13 }
 0x798   :  { %v712_v42 = vpop.f32.mrb[6].mxu1 }
 0x799   :  { %v716_v43 = vadd.f32 %v712_v42, %v162_v41  ;;  %v1094_v44 = vpop.f32.mrb[7].mxu1 }
 0x79b   :  { %1206 = vtanh.f32 %v716_v43  ;;  %v958_v46 = vmul.f32 -1.442695, %v716_v43 }
 0x79d   :  { %1208 = vpow2.f32 %v958_v46 }
 0x7a5   :  { %v1207_v45 = vpop.eup %1206 }
 0x7a6   :  { %727 = vrot.lane.b32.xlu1 %v1207_v45, %s1251_s10 }
 0x7a7   :  { %v1209_v7 = vpop.eup %1208 }
 0x7a8   :  { %v720_v48 = vadd.f32 1.0, %v1209_v7 }
 0x7aa   :  { %1210 = vrcp.f32 %v720_v48 }
 0x7b4   :  { %v1211_v10 = vpop.eup %1210 }
 0x7b5   :  { %v725_v49 = vsub.f32 1.0, %v1211_v10  ;;  %v724_v52 = vmul.f32 %v1211_v10, %v641_v40 }
 0x818   :  { %v728_v3 = vpop.permute.xlu1 %727 }
 0x819   :  { %v730_v13 = vmul.f32 %v728_v3, %v725_v49 }
 0x81b   :  { %v731_v53 = vadd.f32 %v730_v13, %v724_v52 }
 0x81d   :  { %1104 = vmatmul.mubr.msk.f32.vlgmr.msra.gmra.mrb[12].mxu0 %vm26_vm1, %v731_v53 }
 0x8f0   :  { %v805_v54 = vpop.f32.mrb[12].mxu0 }
 0x8f1   :  { %v809_v55 = vadd.f32 %v805_v54, %v167_v47  ;;  %v1105_v56 = vpop.f32.mrb[13].mxu0 }
 0x8f3   :  { %1212 = vtanh.f32 %v809_v55  ;;  %v960_v59 = vmul.f32 -1.442695, %v809_v55 }
 0x8f5   :  { %1214 = vpow2.f32 %v960_v59 }
 0x8fd   :  { %v1213_v58 = vpop.eup %1212 }
 0x8fe   :  { %820 = vrot.lane.b32.xlu0 %v1213_v58, %s1251_s10 }
 0x8ff   :  { %v1215_v51 = vpop.eup %1214 }
 0x900   :  { %v813_v60 = vadd.f32 1.0, %v1215_v51 }
 0x902   :  { %361 = vrot.lane.b32.xlu0 %v1389_v57, %s1252_s0  ;;  %1216 = vrcp.f32 %v813_v60 }
 0x906   :  { %455 = vrot.lane.b32.xlu0 %v1402_v9, %s1253_s22 }
 0x90a   :  { %549 = vrot.lane.b32.xlu0 %v547_v26, %s1251_s10 }
 0x90c   :  { %v1217_v61 = vpop.eup %1216 }
 0x90d   :  { %v818_v62 = vsub.f32 1.0, %v1217_v61  ;;  %v817_v0 = vmul.f32 %v1217_v61, %v731_v53 }
 0x970   :  { %v821_v63 = vpop.permute.xlu0 %820 }
 0x971   :  { %v823_v1 = vmul.f32 %v821_v63, %v818_v62 }
 0x973   :  { %v824_v2 = vadd.f32 %v823_v1, %v817_v0 }
 0x974   :  { %v362_v4 = vpop.permute.xlu0 %361 }
 0x975   :  { %365 = vst.msk [vmem:[#allocation3] sm:$0xff] %vm364_vm3, %v362_v4  ;;  %1115 = vmatmul.mubr.msk.f32.vlgmr.msra.gmra.mrb[8].mxu1 %vm26_vm1, %v824_v2 }
 0x978   :  { %v456_v57 = vpop.permute.xlu0 %455 }
 0x979   :  { %459 = vst.msk [vmem:[#allocation3] sm:$0xff] %vm458_vm4, %v456_v57 }
 0x97c   :  { %v550_v5 = vpop.permute.xlu0 %549 }
 0x97d   :  { %553 = vst.msk [vmem:[#allocation3] sm:$0xff] %vm552_vm5, %v550_v5 }
 0xa48   :  { %v898_v8 = vpop.f32.mrb[8].mxu1 }
 0xa49   :  { %v902_v9 = vadd.f32 %v898_v8, %v172_v6  ;;  %v1116_v11 = vpop.f32.mrb[9].mxu1 }
 0xa4b   :  { %1218 = vtanh.f32 %v902_v9  ;;  %v962_v14 = vmul.f32 -1.442695, %v902_v9 }
 0xa4d   :  { %1220 = vpow2.f32 %v962_v14 }
 0xa55   :  { %v1219_v12 = vpop.eup %1218 }
 0xa56   :  { %913 = vrot.lane.b32.xlu1 %v1219_v12, %s1251_s10 }
 0xa57   :  { %v1221_v16 = vpop.eup %1220 }
 0xa58   :  { %v906_v17 = vadd.f32 1.0, %v1221_v16 }
 0xa5a   :  { %733 = vrot.lane.b32.xlu1 %v731_v53, %s1252_s0  ;;  %1222 = vrcp.f32 %v906_v17 }
 0xa5e   :  { %826 = vrot.lane.b32.xlu1 %v824_v2, %s1253_s22 }
 0xa64   :  { %v1223_v18 = vpop.eup %1222 }
 0xa65   :  { %v911_v19 = vsub.f32 1.0, %v1223_v18  ;;  %v910_v15 = vmul.f32 %v1223_v18, %v824_v2 }
 0xac8   :  { %v914_v20 = vpop.permute.xlu1 %913 }
 0xac9   :  { %v916_v50 = vmul.f32 %v914_v20, %v911_v19 }
 0xacb   :  { %v917_v21 = vadd.f32 %v916_v50, %v910_v15 }
 0xacc   :  { %v734_v22 = vpop.permute.xlu1 %733 }
 0xacd   :  { %923 = vst.msk [vmem:[#allocation2] sm:$0xff] %vm26_vm1, %v917_v21  ;;  %919 = vrot.lane.b32.xlu1 %v917_v21, %s1251_s10 }
 0xace   :  { %736 = vst.msk [vmem:[#allocation3 + $0x8] sm:$0xff] %vm364_vm3, %v734_v22 }
 0xad0   :  { %v827_v23 = vpop.permute.xlu1 %826 }
 0xad1   :  { %829 = vst.msk [vmem:[#allocation3 + $0x8] sm:$0xff] %vm458_vm4, %v827_v23 }
 0xb3f   :  { %v920_v24 = vpop.permute.xlu1 %919 }
 0xb40   :  { %922 = vst.msk [vmem:[#allocation3 + $0x8] sm:$0xff] %vm552_vm5, %v920_v24 }
 0xb41   :  { %1235 = shalt.err (!%p1232_p4)
}
 0xb42   :  { %s1236_s2 = scalar_lea.hbm %s1474_s5, 256 }
 0xb43   :  { %p1237_p5 = scmp.ne.s32.totalorder %s1474_s5, %s1236_s2  ;;  %p1240_p6 = scmp.lt.u32.totalorder %s1236_s2, %s1474_s5 }
 0xb45   :  { %p1242_p7 = pnand %p1240_p6, %p1237_p5 }
 0xb47   :  { %1245 = shalt.err (!%p1242_p7)
}
 0xb48   :  { %933 = dma.vmem_to_hbm [thread:$0]  %s931_s24, 256, %s1474_s5, [#allocation4]  }
 0xb49   :  { %1246 = dma.done.wait [#allocation4], 256  }
 0xb4a   :  { %1247 = vsyncadd [#allocation4], 4294967040 }
 0xb4b   :  { %937 = vsyncpa [#allocation4], 1 }

</bundles_post_ra>
